<compile_context>
chip_gen: v7x
topology: tpu7x:2x2x1
jax: 0.10.0
libtpu: 0.0.40
codegen_flags: <defaults>
</compile_context>

<pallas_src>
import jax
import jax.numpy as jnp
from jax import lax
from jax.experimental import pallas as pl
from jax.experimental.pallas import tpu as pltpu

_LANE = 128


def mlp_kernel(x_ref, w1_ref, b1_ref, w2_ref, b2_ref, o_ref):
    # x:  (TB, F)      activations for this batch tile
    # w1: (H, F)       torch Linear layout (out, in) -- contracted in-kernel, no host .T
    # b1: (1, H)
    # w2: (Opad, H)    torch layout, zero-padded to a lane-dense output width
    # b2: (1, Opad)
    x = x_ref[...]

    # Hidden layer: x @ W1.T + b1, sigmoid (EUP exp path, f32).
    h = lax.dot_general(
        x, w1_ref[...],
        dimension_numbers=(((1,), (1,)), ((), ())),
        preferred_element_type=jnp.float32,
    )
    h = jax.nn.sigmoid(h + b1_ref[...])          # (TB, H) + (1, H) broadcast

    # Output layer: h @ W2.T + b2 (regression head, no activation).
    y = lax.dot_general(
        h, w2_ref[...],
        dimension_numbers=(((1,), (1,)), ((), ())),
        preferred_element_type=jnp.float32,
    )
    o_ref[...] = (y + b2_ref[...]).astype(o_ref.dtype)   # lane-dense (TB, Opad) store


def net_forward(x, w1, b1, w2, b2, *, block_b=512):
    """Forward pass of Net (matches torch: sigmoid(x @ W1.T + b1) @ W2.T + b2).

    x  : (B, F) float32
    w1 : (H, F) torch Linear weight layout (out, in)
    b1 : (H,)
    w2 : (O, H)
    b2 : (O,)
    returns (B, O) float32
    """
    B, F = x.shape
    H = w1.shape[0]
    O = w2.shape[0]

    # --- Lane-dense output head: pad O up to a multiple of 128 lanes with zeros. ---
    o_pad = ((O + _LANE - 1) // _LANE) * _LANE
    w2_p = jnp.zeros((o_pad, H), w2.dtype).at[:O, :].set(w2)
    b2_p = jnp.zeros((1, o_pad), b2.dtype).at[0, :O].set(b2)
    b1_2d = b1.reshape(1, H)

    # --- Batch tile: largest sublane-aligned (multiple of 8) tile <= block_b. ---
    if B >= 8:
        tb = min(block_b, (B // 8) * 8)
    else:
        tb = B
    nb = pl.cdiv(B, tb)

    grid_spec = pltpu.PrefetchScalarGridSpec(
        num_scalar_prefetch=0,
        grid=(nb,),
        in_specs=[
            pl.BlockSpec((tb, F), lambda i: (i, 0)),        # x: tiled over batch
            pl.BlockSpec((H, F), lambda i: (0, 0)),         # w1: VMEM-resident
            pl.BlockSpec((1, H), lambda i: (0, 0)),         # b1: VMEM-resident
            pl.BlockSpec((o_pad, H), lambda i: (0, 0)),     # w2 (padded): VMEM-resident
            pl.BlockSpec((1, o_pad), lambda i: (0, 0)),     # b2 (padded): VMEM-resident
        ],
        out_specs=pl.BlockSpec((tb, o_pad), lambda i: (i, 0)),
    )

    y_pad = pl.pallas_call(
        mlp_kernel,
        out_shape=jax.ShapeDtypeStruct((B, o_pad), jnp.float32),
        grid_spec=grid_spec,
        compiler_params=pltpu.CompilerParams(
            # Batch axis is fully parallel -> shard grid steps across v7x's 2 TCs.
            dimension_semantics=("parallel",),
        ),
    )(x, w1, b1_2d, w2_p, b2_p)

    return y_pad[:, :O]


def net_forward_ref(x, w1, b1, w2, b2):
    h = jax.nn.sigmoid(x @ w1.T + b1)
    return h @ w2.T + b2


if __name__ == "__main__":
    # Shapes consistent with the module: Net(input=16, H=32, output=4).
    # Batch 256 with a 128-row tile exercises the pipelined, megacore-parallel grid
    # (2 steps) while staying a small, fast demo.
    B, F, H, O = 256, 16, 32, 4

    key = jax.random.PRNGKey(0)
    kx, kw1, kb1, kw2, kb2 = jax.random.split(key, 5)

    x = jax.random.normal(kx, (B, F), dtype=jnp.float32)
    # Deterministic init mimicking torch.nn.Linear's uniform(-1/sqrt(fan_in), 1/sqrt(fan_in)).
    lim1 = 1.0 / jnp.sqrt(jnp.float32(F))
    lim2 = 1.0 / jnp.sqrt(jnp.float32(H))
    w1 = jax.random.uniform(kw1, (H, F), jnp.float32, -lim1, lim1)
    b1 = jax.random.uniform(kb1, (H,), jnp.float32, -lim1, lim1)
    w2 = jax.random.uniform(kw2, (O, H), jnp.float32, -lim2, lim2)
    b2 = jax.random.uniform(kb2, (O,), jnp.float32, -lim2, lim2)

    out = net_forward(x, w1, b1, w2, b2, block_b=128)
    out = jax.block_until_ready(out)

    ref = net_forward_ref(x, w1, b1, w2, b2)
    assert out.shape == (B, O)
    assert jnp.allclose(out, ref, atol=1e-5, rtol=1e-5), "mismatch vs reference"

    print("KERNEL_OK")
</pallas_src>

<mosaic_0001>
module attributes {stable_mosaic.version = 11 : i64} {
  func.func @mlp_kernel(%arg0: i32, %arg1: memref<128x16xf32, #tpu.memory_space<vmem>>, %arg2: memref<32x16xf32, #tpu.memory_space<vmem>>, %arg3: memref<1x32xf32, #tpu.memory_space<vmem>>, %arg4: memref<128x32xf32, #tpu.memory_space<vmem>>, %arg5: memref<1x128xf32, #tpu.memory_space<vmem>>, %arg6: memref<128x128xf32, #tpu.memory_space<vmem>>) attributes {dimension_semantics = [#tpu.dimension_semantics<parallel>], iteration_bounds = array<i64: 2>, scalar_prefetch = 0 : i64, scratch_operands = 0 : i64, tpu.core_type = #tpu.core_type<tc>, window_params = [{transform_indices = @transform_0, window_bounds = array<i64: 128, 16>}, {pipeline_mode = #tpu.pipeline_mode<synchronous>, transform_indices = @transform_1, window_bounds = array<i64: 32, 16>}, {pipeline_mode = #tpu.pipeline_mode<synchronous>, transform_indices = @transform_2, window_bounds = array<i64: 1, 32>}, {pipeline_mode = #tpu.pipeline_mode<synchronous>, transform_indices = @transform_3, window_bounds = array<i64: 128, 32>}, {pipeline_mode = #tpu.pipeline_mode<synchronous>, transform_indices = @transform_4, window_bounds = array<i64: 1, 128>}, {transform_indices = @transform_5, window_bounds = array<i64: 128, 128>}]} {
    %c0 = arith.constant 0 : index
    %c0_0 = arith.constant 0 : index
    %0 = vector.load %arg1[%c0, %c0_0] : memref<128x16xf32, #tpu.memory_space<vmem>>, vector<128x16xf32>
    %c0_1 = arith.constant 0 : index
    %c0_2 = arith.constant 0 : index
    %1 = vector.load %arg2[%c0_1, %c0_2] : memref<32x16xf32, #tpu.memory_space<vmem>>, vector<32x16xf32>
    %cst = arith.constant dense<0.000000e+00> : vector<128x32xf32>
    %2 = tpu.matmul %0, %1, %cst {dimension_numbers = #tpu.dot_dimension_numbers<[1], [1], [0], [0], [0, 0, 1, 0], [], []>} : vector<128x16xf32>, vector<32x16xf32>, vector<128x32xf32> -> vector<128x32xf32>
    %c0_3 = arith.constant 0 : index
    %c0_4 = arith.constant 0 : index
    %3 = vector.load %arg3[%c0_3, %c0_4] : memref<1x32xf32, #tpu.memory_space<vmem>>, vector<1x32xf32>
    %4 = vector.broadcast %3 : vector<1x32xf32> to vector<128x32xf32>
    %5 = arith.addf %2, %4 : vector<128x32xf32>
    %6 = arith.negf %5 : vector<128x32xf32>
    %7 = math.exp %6 : vector<128x32xf32>
    %cst_5 = arith.constant 1.000000e+00 : f32
    %8 = vector.broadcast %cst_5 : f32 to vector<128x32xf32>
    %9 = arith.addf %8, %7 : vector<128x32xf32>
    %10 = arith.divf %8, %9 : vector<128x32xf32>
    %c0_6 = arith.constant 0 : index
    %c0_7 = arith.constant 0 : index
    %11 = vector.load %arg4[%c0_6, %c0_7] : memref<128x32xf32, #tpu.memory_space<vmem>>, vector<128x32xf32>
    %cst_8 = arith.constant dense<0.000000e+00> : vector<128x128xf32>
    %12 = tpu.matmul %10, %11, %cst_8 {dimension_numbers = #tpu.dot_dimension_numbers<[1], [1], [0], [0], [0, 0, 1, 0], [], []>} : vector<128x32xf32>, vector<128x32xf32>, vector<128x128xf32> -> vector<128x128xf32>
    %c0_9 = arith.constant 0 : index
    %c0_10 = arith.constant 0 : index
    %13 = vector.load %arg5[%c0_9, %c0_10] : memref<1x128xf32, #tpu.memory_space<vmem>>, vector<1x128xf32>
    %14 = vector.broadcast %13 : vector<1x128xf32> to vector<128x128xf32>
    %15 = arith.addf %12, %14 : vector<128x128xf32>
    %c0_11 = arith.constant 0 : index
    %c0_12 = arith.constant 0 : index
    %16 = vector.load %arg6[%c0_11, %c0_12] : memref<128x128xf32, #tpu.memory_space<vmem>>, vector<128x128xf32>
    tpu.vector_store %arg6[%c0_11, %c0_12], %15 {strides = array<i32>} : memref<128x128xf32, #tpu.memory_space<vmem>>, vector<128x128xf32>,
    return
  }
  func.func @transform_0(%arg0: i32) -> (i32, i32) {
    %c0_i32 = arith.constant 0 : i32
    %c0_i32_0 = arith.constant 0 : i32
    return %arg0, %c0_i32 : i32, i32
  }
  func.func @transform_1(%arg0: i32) -> (i32, i32) {
    %c0_i32 = arith.constant 0 : i32
    %c0_i32_0 = arith.constant 0 : i32
    %c0_i32_1 = arith.constant 0 : i32
    return %c0_i32, %c0_i32_0 : i32, i32
  }
  func.func @transform_2(%arg0: i32) -> (i32, i32) {
    %c0_i32 = arith.constant 0 : i32
    %c0_i32_0 = arith.constant 0 : i32
    %c0_i32_1 = arith.constant 0 : i32
    return %c0_i32, %c0_i32_0 : i32, i32
  }
  func.func @transform_3(%arg0: i32) -> (i32, i32) {
    %c0_i32 = arith.constant 0 : i32
    %c0_i32_0 = arith.constant 0 : i32
    %c0_i32_1 = arith.constant 0 : i32
    return %c0_i32, %c0_i32_0 : i32, i32
  }
  func.func @transform_4(%arg0: i32) -> (i32, i32) {
    %c0_i32 = arith.constant 0 : i32
    %c0_i32_0 = arith.constant 0 : i32
    %c0_i32_1 = arith.constant 0 : i32
    return %c0_i32, %c0_i32_0 : i32, i32
  }
  func.func @transform_5(%arg0: i32) -> (i32, i32) {
    %c0_i32 = arith.constant 0 : i32
    %c0_i32_0 = arith.constant 0 : i32
    return %arg0, %c0_i32 : i32, i32
  }
}

</mosaic_0001>

<bundles_post_ra>
// kernel: tpu_custom_call.1
= control target key start
LH: loop header
LB: loop body
LE: loop exit
PB: predicated region body
PF: predicated region fallthrough
CT: control target
= control target key end

     0   :  { %10 = vsyncpa [#allocation3], 0  ;;  %s1756_s0 = inlined_call_operand.vmem [shape: f32[256,16], index: 0, kind: input, shape index: {}]   ;;  %s1757_s1 = inlined_call_operand.vmem [shape: f32[32,16], index: 1, kind: input, shape index: {}]   ;;  %s1758_s2 = inlined_call_operand.vmem [shape: f32[1,32], index: 2, kind: input, shape index: {}]   ;;  %s1759_s3 = inlined_call_operand.vmem [shape: f32[128,32], index: 3, kind: input, shape index: {}]   ;;  %s1760_s4 = inlined_call_operand.vmem [shape: f32[1,128], index: 4, kind: input, shape index: {}]   ;;  %s1761_s5 = inlined_call_operand.hbm [shape: f32[256,128], index: 5, kind: output, shape index: {}]  }
   0x1   :  { %12 = vsyncpa [#allocation3 + $0x1], 0  ;;  %s1413_s18 = smov 0   ;;  %s1415_s19 = smov 0  }
   0x2   :  { %s1417_s20 = smov 0   ;;  %s1419_s21 = smov 0  }
   0x3 LB: > { %s1434_s22 = sadd.s32 4294967295, %s1378_s21   ;;  %s912_s23 = sadd.s32 4294967294, %s1378_s21   ;;  %s1378_s21 = sphi %s1419_s21, %s1771_s21   ;;  %s1374_s20 = sphi %s1417_s20, %s1770_s20   ;;  %s1370_s19 = sphi %s1415_s19, %s1769_s19   ;;  %s1366_s18 = sphi %s1413_s18, %s1768_s18  }
   0x4   : > { %s1438_s24 = sadd.s32 1, %s1378_s21   ;;  %s135_s25 = sadd.s32 1, %s1374_s20 }
   0x5   : > { %s132_s26 = ssub.s32 %s1378_s21, %s1438_s24  ;;  %p145_p0 = scmp.ne.s32.totalorder %s1374_s20, %s1370_s19 }
   0x6   : > { %p133_p1 = scmp.eq.s32.totalorder %s132_s26, 0  ;;  %p146_p2 = scmp.eq.s32.totalorder %s1434_s22, 1 }
   0x7   : > { %p151_p3 = scmp.ne.s32.totalorder %s1370_s19, %s1366_s18  ;;  %p152_p4 = scmp.eq.s32.totalorder %s912_s23, 1 }
   0x8   : > { %s1449_s27 = scalar_select %p133_p1, %s1374_s20, %s135_s25  }
   0x9   : > { %p1451_p5 = por %p146_p2, %p145_p0  ;;  %p1455_p6 = por %p152_p4, %p151_p3 }
   0xa   : > { %p915_p7 = scmp.ge.s32.totalorder %s1378_s21, 1  ;;  %p191_p8 = scmp.lt.s32.totalorder %s1378_s21, 3 }
   0xc   : > { %p192_p9 = pnand %p915_p7, %p191_p8 }
   0xd   : > { %v242_v0 = vld [vmem:[%s1757_s1] sm:$0xff] (!%p192_p9)  ;;  %v243_v1 = vld [vmem:[%s1757_s1 + $0x8] sm:$0xff] (!%p192_p9)  ;;  %vm253_vm0 = vcmask (!%p192_p9), 130048   ;;  %v244_v2 = vld [vmem:[%s1757_s1 + $0x10] sm:$0xff] (!%p192_p9)  ;;  %s917_s11 = sshll.u32 (!%p192_p9), %s1434_s22, 4  ;;  %vm578_vm2 = vcmask (!%p192_p9), 261120  }
   0xe   : > { %195 = sbr.rel (%p192_p9) target bundleno = 534 (0x216), region = 40  ;;  %v1135_v3 = vpack.c.bf16 (!%p192_p9), %v243_v1, %v242_v0  ;;  %vm1473_vm1 = vmpackc.low (!%p192_p9), %vm253_vm0, %vm253_vm0  ;;  %v245_v5 = vld [vmem:[%s1757_s1 + $0x18] sm:$0xff] (!%p192_p9)  ;;  %p220_p10 = scmp.lt.s32.totalorder (!%p192_p9), %s917_s11, 31  ;;  %v555_v6 = vld [vmem:[%s1759_s3] sm:$0xff] (!%p192_p9) }
   0xf   : > { %v1141_v7 = vpack.c.bf16 (!%p192_p9), %v245_v5, %v244_v2  ;;  %v556_v8 = vld [vmem:[%s1759_s3 + $0x8] sm:$0xff] (!%p192_p9)  ;;  %v557_v9 = vld [vmem:[%s1759_s3 + $0x10] sm:$0xff] (!%p192_p9)  ;;  %v558_v11 = vld [vmem:[%s1759_s3 + $0x18] sm:$0xff] (!%p192_p9)  ;;  %s216_s26 = sand.u32 (!%p192_p9), 1, %s1370_s19   ;;  %s994_s10 = sshll.u32 (!%p192_p9), %s1434_s22, 11 }
  0x10   : > { %1137 = vmatprep.subr.msk.bf16.mxu0 (!%p192_p9), %vm1473_vm1, %v1135_v3  ;;  %v1147_v10 = vpack.c.bf16 (!%p192_p9), %v556_v8, %v555_v6  ;;  %vm1498_vm3 = vmpackc.low (!%p192_p9), %vm578_vm2, %vm578_vm2  ;;  %v1153_v13 = vpack.c.bf16 (!%p192_p9), %v558_v11, %v557_v9  ;;  %v559_v15 = vld [vmem:[%s1759_s3 + $0x20] sm:$0xff] (!%p192_p9)  ;;  %v560_v16 = vld [vmem:[%s1759_s3 + $0x28] sm:$0xff] (!%p192_p9)  ;;  %s916_s30 = sshll.u32 (!%p192_p9), %s216_s26, 7  ;;  %s1707_s13 = scalar_lea.hbm (!%p192_p9), %s1761_s5, %s994_s10 }
  0x11   : > { %1140 = vmatpush3.bf16.xpose.msk.msra.mxu0 (!%p192_p9), %vm1473_vm1, %v1135_v3  ;;  %v1159_v17 = vpack.c.bf16 (!%p192_p9), %v560_v16, %v559_v15  ;;  %v561_v20 = vld [vmem:[%s1759_s3 + $0x30] sm:$0xff] (!%p192_p9)  ;;  %v562_v21 = vld [vmem:[%s1759_s3 + $0x38] sm:$0xff] (!%p192_p9)  ;;  %v563_v27 = vld [vmem:[%s1759_s3 + $0x40] sm:$0xff] (!%p192_p9)  ;;  %s1686_s8 = scalar_lea.vmem (!%p192_p9), [#allocation2], %s916_s30  ;;  %s1715_s22 = scalar_lea.sflag (!%p192_p9), [#allocation3], %s216_s26 }
  0x12   : > { %1143 = vmatprep.subr.msk.bf16.mxu0 (!%p192_p9), %vm1473_vm1, %v1141_v7  ;;  %1195 = vmatprep.subr.msk.bf16.mxu1 (!%p192_p9), %vm1498_vm3, %v1147_v10  ;;  %v1165_v24 = vpack.c.bf16 (!%p192_p9), %v562_v21, %v561_v20  ;;  %v564_v28 = vld [vmem:[%s1759_s3 + $0x48] sm:$0xff] (!%p192_p9)  ;;  %v565_v39 = vld [vmem:[%s1759_s3 + $0x50] sm:$0xff] (!%p192_p9)  ;;  %v566_v40 = vld [vmem:[%s1759_s3 + $0x58] sm:$0xff] (!%p192_p9)  ;;  %s1380_s15 = smov (!%p192_p9), [#allocation2]  }
  0x13   : > { %1203 = vmatpush3.bf16.xpose.msk.msra.mxu1 (!%p192_p9), %vm1498_vm3, %v1147_v10  ;;  %v1171_v31 = vpack.c.bf16 (!%p192_p9), %v564_v28, %v563_v27  ;;  %v1177_v41 = vpack.c.bf16 (!%p192_p9), %v566_v40, %v565_v39  ;;  %v567_v42 = vld [vmem:[%s1759_s3 + $0x60] sm:$0xff] (!%p192_p9)  ;;  %v568_v43 = vld [vmem:[%s1759_s3 + $0x68] sm:$0xff] (!%p192_p9)  ;;  %v569_v45 = vld [vmem:[%s1759_s3 + $0x70] sm:$0xff] (!%p192_p9)  ;;  %s1320_s16 = sshll.u32 (!%p192_p9), %s1380_s15, 4  ;;  %s1321_s16 = int_to_ptr.vmem [resolvable:$false] %s1320_s16 }
  0x14   : > { %1196 = vmatprep.subr.msk.bf16.mxu1 (!%p192_p9), %vm1498_vm3, %v1153_v13  ;;  %v1183_v44 = vpack.c.bf16 (!%p192_p9), %v568_v43, %v567_v42  ;;  %v570_v46 = vld [vmem:[%s1759_s3 + $0x78] sm:$0xff] (!%p192_p9)  ;;  %v1646_v48 = vld [vmem:[%s1758_s2] ss:$0 sm:$0xff] (!%p192_p9)  ;;  %s1322_s17 = scalar_lea.vmem (!%p192_p9), %s1321_s16, 4096 }
  0x15   : > { %s1773_s11 = smov (!%p220_p10, %s917_s11), 31  ;;  %v1189_v47 = vpack.c.bf16 %v570_v46, %v569_v45 }
  0x16   : > { %s918_s6 = sshll.u32 %s1773_s11, 3 }
  0x17   : > { %s1509_s9 = scalar_lea.vmem %s1756_s0, %s918_s6 }
  0x18   : > { %v226_v14 = vld [vmem:[%s1509_s9] sm:$0xff]  ;;  %v227_v18 = vld [vmem:[%s1509_s9 + $0x8] sm:$0xff]  ;;  %v228_v19 = vld [vmem:[%s1509_s9 + $0x10] sm:$0xff] }
  0x19   : > { %1055 = vmatprep.mubr.msk.f32.mxu0 %vm253_vm0, %v226_v14  ;;  %1146 = vmatpush3.bf16.xpose.msk.msra.mxu0 %vm1473_vm1, %v1141_v7  ;;  %v229_v22 = vld [vmem:[%s1509_s9 + $0x18] sm:$0xff]  ;;  %v230_v23 = vld [vmem:[%s1509_s9 + $0x20] sm:$0xff]  ;;  %v231_v25 = vld [vmem:[%s1509_s9 + $0x28] sm:$0xff] }
  0x1a   : > { %1149 = vmatprep.subr.msk.bf16.mxu0 %vm1498_vm3, %v1147_v10  ;;  %v232_v26 = vld [vmem:[%s1509_s9 + $0x30] sm:$0xff]  ;;  %v233_v29 = vld [vmem:[%s1509_s9 + $0x38] sm:$0xff]  ;;  %v234_v30 = vld [vmem:[%s1509_s9 + $0x40] sm:$0xff] }
  0x1b   : > { %1204 = vmatpush3.bf16.xpose.msk.msra.mxu1 %vm1498_vm3, %v1153_v13  ;;  %v235_v32 = vld [vmem:[%s1509_s9 + $0x48] sm:$0xff]  ;;  %v236_v33 = vld [vmem:[%s1509_s9 + $0x50] sm:$0xff]  ;;  %v237_v34 = vld [vmem:[%s1509_s9 + $0x58] sm:$0xff] }
  0x1c   : > { %1197 = vmatprep.subr.msk.bf16.mxu1 %vm1498_vm3, %v1159_v17  ;;  %v238_v35 = vld [vmem:[%s1509_s9 + $0x60] sm:$0xff]  ;;  %v239_v36 = vld [vmem:[%s1509_s9 + $0x68] sm:$0xff]  ;;  %v240_v37 = vld [vmem:[%s1509_s9 + $0x70] sm:$0xff] }
  0x1d   : > { %v241_v38 = vld [vmem:[%s1509_s9 + $0x78] sm:$0xff]  ;;  %s850_s9 = sshll.u32 %s1686_s8, 4  ;;  %s1709_s9 = int_to_ptr.vmem [resolvable:$true] %s850_s9 }
  0x1e   : > { %s1316_s14 = scalar_lea.vmem %s1709_s9, 2048  ;;  %p1323_p0 = scmp.lt.s32.totalorder %s1709_s9, %s1321_s16 }
  0x1f   : > { %p1317_p11 = scmp.ne.s32.totalorder %s1709_s9, %s1316_s14  ;;  %p1324_p1 = scmp.lt.s32.totalorder %s1322_s17, %s1316_s14 }
  0x20   : > { %1056 = vmatmul.mubr.msk.f32.vlgmr.msra.gmra.mrb[0].mxu0 %vm253_vm0, %v227_v18 }
  0x21   : > { %1058 = vmatprep.mubr.msk.f32.mxu0 %vm253_vm0, %v228_v19  ;;  %1152 = vmatpush3.bf16.xpose.msk.msra.mxu0 %vm1498_vm3, %v1147_v10  ;;  %p1318_p12 = pnand %p1317_p11, %p1451_p5  ;;  %p1325_p2 = por %p1324_p1, %p1323_p0 }
  0x22   : > { %1155 = vmatprep.subr.msk.bf16.mxu0 %vm1498_vm3, %v1153_v13 }
  0x23   : > { %1205 = vmatpush3.bf16.xpose.msk.msra.mxu1 %vm1498_vm3, %v1159_v17  ;;  %p1319_p13 = pneg %p1318_p12 }
  0x24   : > { %1059 = vmatmul.mubr.msk.f32.gmra.mrb[2].mxu0 %vm253_vm0, %v229_v22  ;;  %1198 = vmatprep.subr.msk.bf16.mxu1 %vm1498_vm3, %v1165_v24 }
  0x25   : > { %1061 = vmatprep.mubr.msk.f32.mxu0 %vm253_vm0, %v230_v23  ;;  %p1326_p3 = pnand %p1325_p2, %p1319_p13 }
  0x28   : > { %1062 = vmatmul.mubr.msk.f32.gmra.mrb[4].mxu0 %vm253_vm0, %v231_v25 }
  0x29   : > { %1064 = vmatprep.mubr.msk.f32.mxu0 %vm253_vm0, %v232_v26  ;;  %1158 = vmatpush3.bf16.xpose.msk.msra.mxu0 %vm1498_vm3, %v1153_v13 }
  0x2a   : > { %1161 = vmatprep.subr.msk.bf16.mxu0 %vm1498_vm3, %v1159_v17 }
  0x2b   : > { %1206 = vmatpush3.bf16.xpose.msk.msra.mxu1 %vm1498_vm3, %v1165_v24 }
  0x2c   : > { %1065 = vmatmul.mubr.msk.f32.gmra.mrb[6].mxu0 %vm253_vm0, %v233_v29  ;;  %1199 = vmatprep.subr.msk.bf16.mxu1 %vm1498_vm3, %v1171_v31 }
  0x2d   : > { %1067 = vmatprep.mubr.msk.f32.mxu0 %vm253_vm0, %v234_v30 }
  0x30   : > { %1068 = vmatmul.mubr.msk.f32.gmra.mrb[8].mxu0 %vm253_vm0, %v235_v32 }
  0x31   : > { %1070 = vmatprep.mubr.msk.f32.mxu0 %vm253_vm0, %v236_v33  ;;  %1164 = vmatpush3.bf16.xpose.msk.msra.mxu0 %vm1498_vm3, %v1159_v17 }
  0x32   : > { %1167 = vmatprep.subr.msk.bf16.mxu0 %vm1498_vm3, %v1165_v24 }
  0x33   : > { %1207 = vmatpush3.bf16.xpose.msk.msra.mxu1 %vm1498_vm3, %v1171_v31 }
  0x34   : > { %1071 = vmatmul.mubr.msk.f32.gmra.mrb[10].mxu0 %vm253_vm0, %v237_v34  ;;  %1200 = vmatprep.subr.msk.bf16.mxu1 %vm1498_vm3, %v1177_v41 }
  0x35   : > { %1073 = vmatprep.mubr.msk.f32.mxu0 %vm253_vm0, %v238_v35 }
  0x38   : > { %1074 = vmatmul.mubr.msk.f32.gmra.mrb[12].mxu0 %vm253_vm0, %v239_v36 }
  0x39   : > { %1076 = vmatprep.mubr.msk.f32.mxu0 %vm253_vm0, %v240_v37  ;;  %1170 = vmatpush3.bf16.xpose.msk.msra.mxu0 %vm1498_vm3, %v1165_v24 }
  0x3a   : > { %1173 = vmatprep.subr.msk.bf16.mxu0 %vm1498_vm3, %v1171_v31 }
  0x3b   : > { %1208 = vmatpush3.bf16.xpose.msk.msra.mxu1 %vm1498_vm3, %v1177_v41 }
  0x3c   : > { %1077 = vmatmul.mubr.msk.f32.gmra.mrb[14].mxu0 %vm253_vm0, %v241_v38  ;;  %1201 = vmatprep.subr.msk.bf16.mxu1 %vm1498_vm3, %v1183_v44 }
  0x41   : > { %1176 = vmatpush3.bf16.xpose.msk.msra.mxu0 %vm1498_vm3, %v1171_v31 }
  0x42   : > { %1179 = vmatprep.subr.msk.bf16.mxu0 %vm1498_vm3, %v1177_v41 }
  0x43   : > { %1209 = vmatpush3.bf16.xpose.msk.msra.mxu1 %vm1498_vm3, %v1183_v44 }
  0x44   : > { %1202 = vmatprep.subr.msk.bf16.mxu1 %vm1498_vm3, %v1189_v47 }
  0x49   : > { %1182 = vmatpush3.bf16.xpose.msk.msra.mxu0 %vm1498_vm3, %v1177_v41 }
  0x4a   : > { %1185 = vmatprep.subr.msk.bf16.mxu0 %vm1498_vm3, %v1183_v44 }
  0x4b   : > { %1210 = vmatpush3.bf16.xpose.msk.msra.mxu1 %vm1498_vm3, %v1189_v47 }
  0x51   : > { %1188 = vmatpush3.bf16.xpose.msk.msra.mxu0 %vm1498_vm3, %v1183_v44 }
  0x52   : > { %1191 = vmatprep.subr.msk.bf16.mxu0 %vm1498_vm3, %v1189_v47 }
  0x59   : > { %1194 = vmatpush3.bf16.xpose.msk.msra.mxu0 %vm1498_vm3, %v1189_v47 }
  0xf3   : > { %v1057_v49 = vpop.f32.mrb[0].mxu0 }
  0xf4   : > { %v386_v50 = vadd.f32 %v1057_v49, %v1646_v48  ;;  %v380_v51 = vpop.f32.mrb[1].mxu0 }
  0xf5   : > { %v381_v52 = vadd.f32 %v1646_v48, %v380_v51 }
  0xf6   : > { %v941_v53 = vmul.f32 -1.442695, %v386_v50 }
  0xf7   : > { %v940_v54 = vmul.f32 -1.442695, %v381_v52  ;;  %v1060_v55 = vpop.f32.mrb[2].mxu0 }
  0xf8   : > { %1252 = vpow2.f32 %v941_v53  ;;  %v396_v56 = vadd.f32 %v1060_v55, %v1646_v48  ;;  %v390_v57 = vpop.f32.mrb[3].mxu0 }
  0xf9   : > { %1254 = vpow2.f32 %v940_v54  ;;  %v391_v58 = vadd.f32 %v1646_v48, %v390_v57 }
  0xfa   : > { %v943_v59 = vmul.f32 -1.442695, %v396_v56 }
  0xfb   : > { %v942_v60 = vmul.f32 -1.442695, %v391_v58  ;;  %v1063_v61 = vpop.f32.mrb[4].mxu0 }
  0xfc   : > { %1256 = vpow2.f32 %v943_v59  ;;  %v406_v62 = vadd.f32 %v1063_v61, %v1646_v48  ;;  %v400_v63 = vpop.f32.mrb[5].mxu0 }
  0xfd   : > { %1258 = vpow2.f32 %v942_v60  ;;  %v401_v0 = vadd.f32 %v1646_v48, %v400_v63 }
  0xfe   : > { %v945_v1 = vmul.f32 -1.442695, %v406_v62 }
  0xff   : > { %v944_v2 = vmul.f32 -1.442695, %v401_v0  ;;  %v1066_v3 = vpop.f32.mrb[6].mxu0 }
 0x100   : > { %1260 = vpow2.f32 %v945_v1  ;;  %v416_v4 = vadd.f32 %v1066_v3, %v1646_v48  ;;  %v410_v5 = vpop.f32.mrb[7].mxu0 }
 0x101   : > { %1262 = vpow2.f32 %v944_v2  ;;  %v411_v6 = vadd.f32 %v1646_v48, %v410_v5 }
 0x102   : > { %v1253_v7 = vpop.eup %1252  ;;  %v947_v8 = vmul.f32 -1.442695, %v416_v4 }
 0x103   : > { %v1255_v9 = vpop.eup %1254  ;;  %v508_v10 = vadd.f32 1.0, %v1253_v7  ;;  %v946_v11 = vmul.f32 -1.442695, %v411_v6  ;;  %v1069_v12 = vpop.f32.mrb[8].mxu0 }
 0x104   : > { %v507_v13 = vadd.f32 1.0, %v1255_v9  ;;  %1264 = vpow2.f32 %v947_v8  ;;  %v426_v14 = vadd.f32 %v1069_v12, %v1646_v48  ;;  %v420_v15 = vpop.f32.mrb[9].mxu0 }
 0x105   : > { %1266 = vrcp.f32 %v508_v10  ;;  %v421_v16 = vadd.f32 %v1646_v48, %v420_v15 }
 0x106   : > { %v1257_v17 = vpop.eup %1256  ;;  %1268 = vrcp.f32 %v507_v13  ;;  %v949_v18 = vmul.f32 -1.442695, %v426_v14 }
 0x107   : > { %v1259_v19 = vpop.eup %1258  ;;  %v510_v20 = vadd.f32 1.0, %v1257_v17  ;;  %1270 = vpow2.f32 %v946_v11  ;;  %v948_v21 = vmul.f32 -1.442695, %v421_v16  ;;  %v1072_v22 = vpop.f32.mrb[10].mxu0  ;;  %v956_v17 = vld [vmem:[%s1760_s4] ss:$0 sm:$0xff] }
 0x108   : > { %v509_v23 = vadd.f32 1.0, %v1259_v19  ;;  %1272 = vpow2.f32 %v949_v18  ;;  %v436_v24 = vadd.f32 %v1072_v22, %v1646_v48  ;;  %v430_v25 = vpop.f32.mrb[11].mxu0 }
 0x109   : > { %1274 = vrcp.f32 %v510_v20  ;;  %v431_v26 = vadd.f32 %v1646_v48, %v430_v25 }
 0x10a   : > { %v1261_v27 = vpop.eup %1260  ;;  %1276 = vrcp.f32 %v509_v23  ;;  %v951_v28 = vmul.f32 -1.442695, %v436_v24 }
 0x10b   : > { %v1263_v29 = vpop.eup %1262  ;;  %v512_v30 = vadd.f32 1.0, %v1261_v27  ;;  %1278 = vpow2.f32 %v948_v21  ;;  %v950_v31 = vmul.f32 -1.442695, %v431_v26  ;;  %v1075_v32 = vpop.f32.mrb[12].mxu0 }
 0x10c   : > { %v511_v33 = vadd.f32 1.0, %v1263_v29  ;;  %1280 = vpow2.f32 %v951_v28  ;;  %v446_v34 = vadd.f32 %v1075_v32, %v1646_v48  ;;  %v440_v35 = vpop.f32.mrb[13].mxu0 }
 0x10d   : > { %1282 = vrcp.f32 %v512_v30  ;;  %v441_v36 = vadd.f32 %v1646_v48, %v440_v35 }
 0x10e   : > { %v1265_v37 = vpop.eup %1264  ;;  %1284 = vrcp.f32 %v511_v33  ;;  %v953_v38 = vmul.f32 -1.442695, %v446_v34 }
 0x10f   : > { %v1267_v39 = vpop.eup %1266  ;;  %1286 = vpow2.f32 %v950_v31  ;;  %v952_v40 = vmul.f32 -1.442695, %v441_v36  ;;  %v1078_v41 = vpop.f32.mrb[14].mxu0  ;;  %v514_v46 = vadd.f32 1.0, %v1265_v37 }
 0x110   : > { %v1269_v42 = vpop.eup %1268  ;;  %1288 = vpow2.f32 %v953_v38  ;;  %v456_v43 = vadd.f32 %v1078_v41, %v1646_v48  ;;  %v450_v44 = vpop.f32.mrb[15].mxu0 }
 0x111   : > { %v1271_v45 = vpop.eup %1270  ;;  %v451_v47 = vadd.f32 %v1646_v48, %v450_v44  ;;  %1111 = vmatprep.mubr.msk.f32.mxu0 %vm578_vm2, %v1269_v42  ;;  %1290 = vpow2.f32 %v952_v40 }
 0x112   : > { %v1273_v49 = vpop.eup %1272  ;;  %v513_v50 = vadd.f32 1.0, %v1271_v45  ;;  %v955_v51 = vmul.f32 -1.442695, %v456_v43  ;;  %1112 = vmatmul.mubr.msk.f32.vlgmr.msra.gmra.mrb[16].mxu0 %vm578_vm2, %v1267_v39 }
 0x113   : > { %v1275_v52 = vpop.eup %1274  ;;  %v954_v53 = vmul.f32 -1.442695, %v451_v47  ;;  %v516_v56 = vadd.f32 1.0, %v1273_v49 }
 0x114   : > { %v1277_v54 = vpop.eup %1276  ;;  %1292 = vrcp.f32 %v513_v50 }
 0x115   : > { %v1279_v55 = vpop.eup %1278  ;;  %1294 = vrcp.f32 %v514_v46  ;;  %1114 = vmatprep.mubr.msk.f32.mxu0 %vm578_vm2, %v1277_v54 }
 0x116   : > { %v1281_v57 = vpop.eup %1280  ;;  %v515_v58 = vadd.f32 1.0, %v1279_v55  ;;  %1296 = vpow2.f32 %v955_v51  ;;  %1115 = vmatmul.mubr.msk.f32.gmra.mrb[18].mxu0 %vm578_vm2, %v1275_v52 }
 0x117   : > { %v1283_v48 = vpop.eup %1282  ;;  %1298 = vpow2.f32 %v954_v53  ;;  %v518_v61 = vadd.f32 1.0, %v1281_v57 }
 0x118   : > { %v1285_v59 = vpop.eup %1284  ;;  %1300 = vrcp.f32 %v515_v58 }
 0x119   : > { %v1287_v60 = vpop.eup %1286  ;;  %1302 = vrcp.f32 %v516_v56  ;;  %1117 = vmatprep.mubr.msk.f32.mxu1 %vm578_vm2, %v1285_v59 }
 0x11a   : > { %v1289_v62 = vpop.eup %1288  ;;  %v517_v63 = vadd.f32 1.0, %v1287_v60  ;;  %1118 = vmatmul.mubr.msk.f32.vlgmr.msra.gmra.mrb[0].mxu1 %vm578_vm2, %v1283_v48 }
 0x11b   : > { %v1291_v0 = vpop.eup %1290  ;;  %v520_v1 = vadd.f32 1.0, %v1289_v62 }
 0x11c   : > { %1304 = vrcp.f32 %v517_v63  ;;  %v519_v2 = vadd.f32 1.0, %v1291_v0 }
 0x11d   : > { %1306 = vrcp.f32 %v518_v61 }
 0x11e   : > { %v1293_v3 = vpop.eup %1292  ;;  %1308 = vrcp.f32 %v519_v2 }
 0x11f   : > { %v1295_v4 = vpop.eup %1294  ;;  %1120 = vmatprep.mubr.msk.f32.mxu1 %vm578_vm2, %v1293_v3  ;;  %1310 = vrcp.f32 %v520_v1 }
 0x120   : > { %v1297_v5 = vpop.eup %1296  ;;  %1121 = vmatmul.mubr.msk.f32.gmra.mrb[2].mxu1 %vm578_vm2, %v1295_v4 }
 0x121   : > { %v1299_v6 = vpop.eup %1298  ;;  %v522_v7 = vadd.f32 1.0, %v1297_v5 }
 0x122   : > { %v1301_v8 = vpop.eup %1300  ;;  %v521_v9 = vadd.f32 1.0, %v1299_v6 }
 0x123   : > { %v1303_v10 = vpop.eup %1302  ;;  %1123 = vmatprep.mubr.msk.f32.mxu1 %vm578_vm2, %v1301_v8 }
 0x124   : > { %1312 = vrcp.f32 %v521_v9  ;;  %1124 = vmatmul.mubr.msk.f32.gmra.mrb[4].mxu1 %vm578_vm2, %v1303_v10 }
 0x125   : > { %1314 = vrcp.f32 %v522_v7 }
 0x126   : > { %v1305_v11 = vpop.eup %1304 }
 0x127   : > { %v1307_v12 = vpop.eup %1306  ;;  %1126 = vmatprep.mubr.msk.f32.mxu1 %vm578_vm2, %v1305_v11 }
 0x128   : > { %1127 = vmatmul.mubr.msk.f32.gmra.mrb[6].mxu1 %vm578_vm2, %v1307_v12  ;;  %v1309_v13 = vpop.eup %1308 }
 0x129   : > { %1129 = vmatprep.mubr.msk.f32.mxu1 %vm578_vm2, %v1309_v13  ;;  %v1311_v14 = vpop.eup %1310 }
 0x12c   : > { %1130 = vmatmul.mubr.msk.f32.gmra.mrb[8].mxu1 %vm578_vm2, %v1311_v14 }
 0x12e   : > { %v1313_v15 = vpop.eup %1312 }
 0x12f   : > { %v1315_v16 = vpop.eup %1314  ;;  %1132 = vmatprep.mubr.msk.f32.mxu1 %vm578_vm2, %v1313_v15 }
 0x130   : > { %1133 = vmatmul.mubr.msk.f32.gmra.mrb[10].mxu1 %vm578_vm2, %v1315_v16 }
 0x1e5   : > { %v1113_v18 = vpop.f32.mrb[16].mxu0 }
 0x1e6   : > { %v747_v19 = vadd.f32 %v1113_v18, %v956_v17  ;;  %v741_v20 = vpop.f32.mrb[17].mxu0 }
 0x1e7   : > { %v742_v21 = vadd.f32 %v956_v17, %v741_v20 }
 0x1e8   : > { %821 = vst [vmem:[%s1686_s8 + $0x8] sm:$0xff] %v747_v19 }
 0x1e9   : > { %820 = vst [vmem:[%s1686_s8] sm:$0xff] %v742_v21  ;;  %v1116_v22 = vpop.f32.mrb[18].mxu0 }
 0x1ea   : > { %v757_v23 = vadd.f32 %v1116_v22, %v956_v17  ;;  %v751_v24 = vpop.f32.mrb[19].mxu0 }
 0x1eb   : > { %v752_v25 = vadd.f32 %v956_v17, %v751_v24 }
 0x1ec   : > { %823 = vst [vmem:[%s1686_s8 + $0x18] sm:$0xff] %v757_v23 }
 0x1ed   : > { %822 = vst [vmem:[%s1686_s8 + $0x10] sm:$0xff] %v752_v25  ;;  %v1119_v26 = vpop.f32.mrb[0].mxu1 }
 0x1ee   : > { %v767_v27 = vadd.f32 %v1119_v26, %v956_v17  ;;  %v761_v28 = vpop.f32.mrb[1].mxu1 }
 0x1ef   : > { %v762_v29 = vadd.f32 %v956_v17, %v761_v28 }
 0x1f0   : > { %825 = vst [vmem:[%s1686_s8 + $0x28] sm:$0xff] %v767_v27 }
 0x1f1   : > { %824 = vst [vmem:[%s1686_s8 + $0x20] sm:$0xff] %v762_v29 }
 0x1f3   : > { %v1122_v30 = vpop.f32.mrb[2].mxu1 }
 0x1f4   : > { %v777_v31 = vadd.f32 %v1122_v30, %v956_v17  ;;  %v771_v32 = vpop.f32.mrb[3].mxu1 }
 0x1f5   : > { %v772_v33 = vadd.f32 %v956_v17, %v771_v32 }
 0x1f6   : > { %827 = vst [vmem:[%s1686_s8 + $0x38] sm:$0xff] %v777_v31 }
 0x1f7   : > { %826 = vst [vmem:[%s1686_s8 + $0x30] sm:$0xff] %v772_v33  ;;  %v1125_v34 = vpop.f32.mrb[4].mxu1 }
 0x1f8   : > { %v787_v35 = vadd.f32 %v1125_v34, %v956_v17  ;;  %v781_v36 = vpop.f32.mrb[5].mxu1 }
 0x1f9   : > { %v782_v37 = vadd.f32 %v956_v17, %v781_v36 }
 0x1fa   : > { %829 = vst [vmem:[%s1686_s8 + $0x48] sm:$0xff] %v787_v35 }
 0x1fb   : > { %828 = vst [vmem:[%s1686_s8 + $0x40] sm:$0xff] %v782_v37  ;;  %v1128_v38 = vpop.f32.mrb[6].mxu1 }
 0x1fc   : > { %v797_v39 = vadd.f32 %v1128_v38, %v956_v17  ;;  %v791_v40 = vpop.f32.mrb[7].mxu1 }
 0x1fd   : > { %v792_v41 = vadd.f32 %v956_v17, %v791_v40 }
 0x1fe   : > { %831 = vst [vmem:[%s1686_s8 + $0x58] sm:$0xff] %v797_v39 }
 0x1ff   : > { %830 = vst [vmem:[%s1686_s8 + $0x50] sm:$0xff] %v792_v41  ;;  %v1131_v42 = vpop.f32.mrb[8].mxu1 }
 0x200   : > { %v807_v43 = vadd.f32 %v1131_v42, %v956_v17  ;;  %v801_v44 = vpop.f32.mrb[9].mxu1 }
 0x201   : > { %v802_v45 = vadd.f32 %v956_v17, %v801_v44 }
 0x202   : > { %833 = vst [vmem:[%s1686_s8 + $0x68] sm:$0xff] %v807_v43 }
 0x203   : > { %832 = vst [vmem:[%s1686_s8 + $0x60] sm:$0xff] %v802_v45  ;;  %v1134_v46 = vpop.f32.mrb[10].mxu1 }
 0x204   : > { %v817_v47 = vadd.f32 %v1134_v46, %v956_v17  ;;  %v811_v49 = vpop.f32.mrb[11].mxu1 }
 0x205   : > { %v812_v50 = vadd.f32 %v956_v17, %v811_v49 }
 0x206   : > { %835 = vst [vmem:[%s1686_s8 + $0x78] sm:$0xff] %v817_v47 }
 0x207   : > { %834 = vst [vmem:[%s1686_s8 + $0x70] sm:$0xff] %v812_v50 }
 0x208   : > { %1329 = shalt.err (!%p1326_p3)
}
 0x209   : > { %s1330_s23 = scalar_lea.hbm %s1707_s13, 2048  ;;  %s1334_s30 = scalar_lea.hbm %s1761_s5, 4096 }
 0x20a   : > { %p1331_p4 = scmp.ne.s32.totalorder %s1707_s13, %s1330_s23  ;;  %p1335_p9 = scmp.lt.u32.totalorder %s1707_s13, %s1761_s5 }
 0x20b   : > { %p1336_p10 = scmp.lt.u32.totalorder %s1334_s30, %s1330_s23  ;;  %p1338_p12 = scmp.lt.u32.totalorder %s1330_s23, %s1707_s13 }
 0x20c   : > { %p1332_p7 = pnand %p1331_p4, %p1451_p5 }
 0x20d   : > { %p1337_p11 = por %p1336_p10, %p1335_p9 }
 0x20e   : > { %p1333_p8 = pneg %p1332_p7 }
 0x20f   : > { %p1339_p13 = por %p1338_p12, %p1337_p11 }
 0x211   : > { %p1340_p0 = pnand %p1339_p13, %p1333_p8 }
 0x213   : > { %1343 = shalt.err (!%p1340_p0)
}
 0x214   : > { %s1381_s8 = smov 128   ;;  %s1382_s10 = smov 8  }
 0x215   : > { %1211 = dma.vmem_to_hbm [thread:$0]  (%p1451_p5), %s1709_s9, 2048, %s1707_s13, %s1715_s22, %s1381_s8, %s1381_s8, %s1382_s10  }
 0x216 PF: > { %p1217_p1 = scmp.ge.s32.totalorder %s1378_s21, 2  ;;  %s865_s11 = sand.u32 1, %s1366_s18  }
 0x217   : > { %s866_s12 = scalar_lea.sflag [#allocation3], %s865_s11 }
 0x218   : > { %p1214_p2 = pnand %p1217_p1, %p1455_p6 }
 0x21a   : > { %1361 = dma.done.wait (!%p1214_p2), %s866_s12, 2048  }
 0x21b   : > { %1363 = vsyncadd (!%p1214_p2), %s866_s12, 4294965248  ;;  %p15_p3 = scmp.ge.s32.totalorder %s1438_s24, 4   ;;  %s1768_s18 = smov %s1370_s19 }
 0x21c   : > { %s1769_s19 = smov %s1374_s20  ;;  %s1770_s20 = smov %s1449_s27 }
 0x21d   : > { %s1771_s21 = smov %s1438_s24  ;;  %17 = sbr.rel (!%p15_p3) target bundleno = 3 (0x3), region = 75 }
 0x224   :  { %871 = vsyncpa [#allocation3], 1 }
 0x225   :  { %873 = vsyncpa [#allocation3 + $0x1], 1 }

</bundles_post_ra>
